<compile_context>
chip_gen: v7x
topology: tpu7x:2x2x1
jax: 0.10.0
libtpu: 0.0.40
codegen_flags: <defaults>
</compile_context>

<pallas_src>
import jax
import jax.numpy as jnp
from jax import lax
from jax.experimental import pallas as pl
from jax.experimental.pallas import tpu as pltpu

HIDDEN = 32      # hidden_size
OUTPUT = 16      # output_size (vocab)
V_PAD = 128      # lane-dense padded vocab width for the log-prob output
G_PAD = 4 * HIDDEN   # packed gate width: [r_pre | z_pre | gi_n | gh_n] = 128 lanes


def decoder_rnn_kernel(tok_ref,        # SMEM scalar-prefetch: (T,) int32 token ids
                       gi_tab_ref,     # (V, 4H)   token-side gate table (biases folded in)
                       w_rec_ref,      # (H, 4H)   recurrent weight [Whh_r.T | Whh_z.T | 0 | Whh_n.T]
                       w_out_ref,      # (H, V_PAD) W_out.T zero-padded on lanes
                       b_out_ref,      # (1, V_PAD) b_out, padding lanes = -1e30
                       h0_ref,         # (1, H)     initial hidden
                       logp_ref,       # out: (T_pad, V_PAD) per-step log-probs
                       h_out_ref,      # out: (1, H)         final hidden
                       h_hist):        # VMEM scratch (T_pad, H): per-step hidden history
    H = HIDDEN
    T = tok_ref.shape[0]
    V = gi_tab_ref.shape[0]

    # Deterministic pad rows (kept out of the recurrence; off the critical path).
    h_hist[...] = jnp.zeros_like(h_hist)

    def step(t, h):
        # Clamp token (no hardware bounds check on VMEM dynamic reads).
        tok = jnp.clip(tok_ref[t], 0, V - 1)

        # Token-side contribution: one dynamic-row gather from the 16x128 table.
        gi = gi_tab_ref[pl.ds(tok, 1), :]                               # (1, 4H)

        # Recurrent contribution: single MXU matmul, K = H = 32.
        gates = gi + jnp.dot(h, w_rec_ref[...],
                             preferred_element_type=jnp.float32)        # (1, 4H)

        # One full-vreg sigmoid; r / z are static lane slices of it.
        sg = jax.nn.sigmoid(gates)
        r = sg[:, 0 * H:1 * H]
        z = sg[:, 1 * H:2 * H]
        n = jnp.tanh(gates[:, 2 * H:3 * H] + r * gates[:, 3 * H:4 * H])
        h_new = (1.0 - z) * n + z * h                                   # (1, H)

        # Stash for the batched post-loop projection (not read by the next step).
        h_hist[pl.ds(t, 1), :] = h_new
        return h_new

    unroll = T if T <= 8 else 8
    h_final = lax.fori_loop(0, T, step, h0_ref[...].astype(jnp.float32),
                            unroll=unroll)
    h_out_ref[...] = h_final

    # Batched output projection + log-softmax over all T_pad rows at once.
    logits = jnp.dot(h_hist[...], w_out_ref[...],
                     preferred_element_type=jnp.float32) + b_out_ref[...]   # (T_pad, V_PAD)
    m = jnp.max(logits, axis=1, keepdims=True)
    shifted = logits - m
    lse = jnp.log(jnp.sum(jnp.exp(shifted), axis=1, keepdims=True))
    logp_ref[...] = shifted - lse                                       # one dense store


def prepare_params(params):
    """One-time glue: fold embedding ReLU, input-side matmul, and all biases
    into a (V, 4H) token table; build the (H, 4H) packed recurrent weight and
    the lane-dense padded output projection."""
    H, V = HIDDEN, OUTPUT
    hp = jax.lax.Precision.HIGHEST

    emb_relu = jnp.maximum(params["embedding"].astype(jnp.float32), 0.0)     # (V, H)
    gi = jnp.dot(emb_relu, params["w_ih"].T, precision=hp) + params["b_ih"]  # (V, 3H)
    b_hh = params["b_hh"].astype(jnp.float32)

    # Token table columns: [gi_r + b_hh_r | gi_z + b_hh_z | gi_n | b_hh_n].
    gi_tab = jnp.concatenate([
        gi[:, 0 * H:1 * H] + b_hh[0 * H:1 * H],
        gi[:, 1 * H:2 * H] + b_hh[1 * H:2 * H],
        gi[:, 2 * H:3 * H],
        jnp.broadcast_to(b_hh[2 * H:3 * H][None, :], (V, H)),
    ], axis=1).astype(jnp.float32)                                            # (V, 4H)

    # Recurrent weight columns: [Whh_r.T | Whh_z.T | 0 | Whh_n.T].
    w_hh_t = params["w_hh"].T.astype(jnp.float32)                             # (H, 3H)
    w_rec = jnp.concatenate([
        w_hh_t[:, 0 * H:1 * H],
        w_hh_t[:, 1 * H:2 * H],
        jnp.zeros((H, H), jnp.float32),
        w_hh_t[:, 2 * H:3 * H],
    ], axis=1)                                                                # (H, 4H)

    # Lane-dense output projection: pad vocab to 128 lanes; padded logits get a
    # -1e30 bias (kept in f32) so they vanish in the log-softmax.
    w_out_t = jnp.zeros((H, V_PAD), jnp.float32).at[:, :V].set(
        params["w_out"].T.astype(jnp.float32))
    b_out = jnp.full((1, V_PAD), -1e30, jnp.float32).at[0, :V].set(
        params["b_out"].astype(jnp.float32))

    return {"gi_tab": gi_tab, "w_rec": w_rec, "w_out_t": w_out_t, "b_out": b_out}


@jax.jit
def decoder_rnn_decode(tokens, hidden, prep):
    """Run T teacher-forced decoder steps in ONE pallas_call.

    tokens: (T,) int32; hidden: (1, 1, H) float32 (GRU initial hidden).
    Returns (log_probs (T, V), final hidden (1, 1, H)).
    """
    T = tokens.shape[0]
    T_pad = ((T + 7) // 8) * 8
    h0 = hidden.reshape((1, HIDDEN)).astype(jnp.float32)

    inputs = (prep["gi_tab"], prep["w_rec"], prep["w_out_t"], prep["b_out"], h0)

    def full_spec(arr):
        nd = arr.ndim
        return pl.BlockSpec(arr.shape, lambda i, tok_ref, _n=nd: (0,) * _n)

    grid_spec = pltpu.PrefetchScalarGridSpec(
        num_scalar_prefetch=1,
        grid=(1,),
        in_specs=[full_spec(a) for a in inputs],
        out_specs=[
            pl.BlockSpec((T_pad, V_PAD), lambda i, tok_ref: (0, 0)),
            pl.BlockSpec((1, HIDDEN), lambda i, tok_ref: (0, 0)),
        ],
        scratch_shapes=[pltpu.VMEM((T_pad, HIDDEN), jnp.float32)],
    )

    logp_pad, h_new = pl.pallas_call(
        decoder_rnn_kernel,
        out_shape=(
            jax.ShapeDtypeStruct((T_pad, V_PAD), jnp.float32),
            jax.ShapeDtypeStruct((1, HIDDEN), jnp.float32),
        ),
        grid_spec=grid_spec,
        compiler_params=pltpu.CompilerParams(
            dimension_semantics=("arbitrary",)),
    )(tokens.astype(jnp.int32), *inputs)

    return logp_pad[:T, :OUTPUT], h_new.reshape((1, 1, HIDDEN))


def decoder_rnn_forward(token, hidden, prep):
    """Single-step API matching the PyTorch module's forward(input, hidden)."""
    tokens = jnp.asarray(token, jnp.int32).reshape((1,))
    logp, h_new = decoder_rnn_decode(tokens, hidden, prep)
    return logp, h_new                     # (1, V), (1, 1, H)


def init_params(key):
    """Deterministic param init matching nn.Embedding / nn.GRU / nn.Linear shapes."""
    ks = jax.random.split(key, 6)
    scale = 1.0 / jnp.sqrt(HIDDEN)
    return {
        "embedding": jax.random.normal(ks[0], (OUTPUT, HIDDEN), jnp.float32),
        "w_ih": jax.random.uniform(ks[1], (3 * HIDDEN, HIDDEN), jnp.float32, -scale, scale),
        "w_hh": jax.random.uniform(ks[2], (3 * HIDDEN, HIDDEN), jnp.float32, -scale, scale),
        "b_ih": jax.random.uniform(ks[3], (3 * HIDDEN,), jnp.float32, -scale, scale),
        "b_hh": jax.random.uniform(ks[4], (3 * HIDDEN,), jnp.float32, -scale, scale),
        "w_out": jax.random.uniform(ks[5], (OUTPUT, HIDDEN), jnp.float32, -scale, scale),
        "b_out": jnp.zeros((OUTPUT,), jnp.float32),
    }


def reference_decode(tokens, hidden, params):
    """Pure-JAX reference with identical PyTorch GRU semantics."""
    H = HIDDEN
    hp = jax.lax.Precision.HIGHEST
    h = hidden.reshape(1, H).astype(jnp.float32)
    logps = []
    for t in range(tokens.shape[0]):
        x = jnp.maximum(params["embedding"][tokens[t]][None, :], 0.0)
        gi = jnp.dot(x, params["w_ih"].T, precision=hp) + params["b_ih"]
        gh = jnp.dot(h, params["w_hh"].T, precision=hp) + params["b_hh"]
        r = jax.nn.sigmoid(gi[:, :H] + gh[:, :H])
        z = jax.nn.sigmoid(gi[:, H:2 * H] + gh[:, H:2 * H])
        n = jnp.tanh(gi[:, 2 * H:] + r * gh[:, 2 * H:])
        h = (1.0 - z) * n + z * h
        logits = jnp.dot(h, params["w_out"].T, precision=hp) + params["b_out"]
        logps.append(jax.nn.log_softmax(logits, axis=1))
    return jnp.concatenate(logps, axis=0), h.reshape(1, 1, H)


if __name__ == "__main__":
    key = jax.random.PRNGKey(0)
    pkey, hkey, tkey = jax.random.split(key, 3)
    params = init_params(pkey)
    prep = prepare_params(params)          # one-time weight prep (hoisted out of decode)

    T = 8
    tokens = jax.random.randint(tkey, (T,), 0, OUTPUT, dtype=jnp.int32)
    hidden = jax.random.normal(hkey, (1, 1, HIDDEN), jnp.float32)

    # Multi-step decode: one pallas_call for all T steps.
    logp, h_new = decoder_rnn_decode(tokens, hidden, prep)
    jax.block_until_ready((logp, h_new))
    assert logp.shape == (T, OUTPUT)
    assert h_new.shape == (1, 1, HIDDEN)

    # Single-step API (matches the PyTorch module's forward signature).
    logp1, h1 = decoder_rnn_forward(tokens[0], hidden, prep)
    jax.block_until_ready((logp1, h1))
    assert logp1.shape == (1, OUTPUT)
    assert h1.shape == (1, 1, HIDDEN)

    # Numerical check against a pure-JAX reference of the PyTorch semantics.
    ref_logp, ref_h = reference_decode(tokens, hidden, params)
    assert jnp.allclose(logp, ref_logp, atol=1e-3, rtol=1e-3)
    assert jnp.allclose(h_new, ref_h, atol=1e-3, rtol=1e-3)
    assert jnp.allclose(logp1, ref_logp[:1], atol=1e-3, rtol=1e-3)

    print("KERNEL_OK")
</pallas_src>

<mosaic_0001>
module attributes {stable_mosaic.version = 11 : i64} {
  func.func @decoder_rnn_kernel(%arg0: i32, %arg1: memref<8xi32, #tpu.memory_space<smem>>, %arg2: memref<16x128xf32, #tpu.memory_space<vmem>>, %arg3: memref<32x128xf32, #tpu.memory_space<vmem>>, %arg4: memref<32x128xf32, #tpu.memory_space<vmem>>, %arg5: memref<1x128xf32, #tpu.memory_space<vmem>>, %arg6: memref<1x32xf32, #tpu.memory_space<vmem>>, %arg7: memref<8x128xf32, #tpu.memory_space<vmem>>, %arg8: memref<1x32xf32, #tpu.memory_space<vmem>>, %arg9: memref<8x32xf32, #tpu.memory_space<vmem>>) attributes {dimension_semantics = [#tpu.dimension_semantics<arbitrary>], iteration_bounds = array<i64: 1>, scalar_prefetch = 1 : i64, scratch_operands = 1 : i64, tpu.core_type = #tpu.core_type<tc>, window_params = [{pipeline_mode = #tpu.pipeline_mode<synchronous>, transform_indices = @transform_0, window_bounds = array<i64: 16, 128>}, {pipeline_mode = #tpu.pipeline_mode<synchronous>, transform_indices = @transform_1, window_bounds = array<i64: 32, 128>}, {pipeline_mode = #tpu.pipeline_mode<synchronous>, transform_indices = @transform_2, window_bounds = array<i64: 32, 128>}, {pipeline_mode = #tpu.pipeline_mode<synchronous>, transform_indices = @transform_3, window_bounds = array<i64: 1, 128>}, {pipeline_mode = #tpu.pipeline_mode<synchronous>, transform_indices = @transform_4, window_bounds = array<i64: 1, 32>}, {pipeline_mode = #tpu.pipeline_mode<synchronous>, transform_indices = @transform_5, window_bounds = array<i64: 8, 128>}, {pipeline_mode = #tpu.pipeline_mode<synchronous>, transform_indices = @transform_6, window_bounds = array<i64: 1, 32>}]} {
    %cst = arith.constant 0.000000e+00 : f32
    %0 = vector.broadcast %cst : f32 to vector<8x32xf32>
    %c0 = arith.constant 0 : index
    %c0_0 = arith.constant 0 : index
    %1 = vector.load %arg9[%c0, %c0_0] : memref<8x32xf32, #tpu.memory_space<vmem>>, vector<8x32xf32>
    tpu.vector_store %arg9[%c0, %c0_0], %0 {strides = array<i32>} : memref<8x32xf32, #tpu.memory_space<vmem>>, vector<8x32xf32>,
    %c0_1 = arith.constant 0 : index
    %c0_2 = arith.constant 0 : index
    %2 = vector.load %arg6[%c0_1, %c0_2] : memref<1x32xf32, #tpu.memory_space<vmem>>, vector<1x32xf32>
    %c0_i32 = arith.constant 0 : i32
    %3 = arith.index_cast %c0_i32 : i32 to index
    %4 = memref.load %arg1[%3] : memref<8xi32, #tpu.memory_space<smem>>
    %c0_i32_3 = arith.constant 0 : i32
    %c15_i32 = arith.constant 15 : i32
    %5 = arith.maxsi %c0_i32_3, %4 : i32
    %6 = arith.minsi %c15_i32, %5 : i32
    %7 = arith.index_cast %6 : i32 to index
    %c0_4 = arith.constant 0 : index
    %8 = vector.load %arg2[%7, %c0_4] : memref<16x128xf32, #tpu.memory_space<vmem>>, vector<1x128xf32>
    %c0_5 = arith.constant 0 : index
    %c0_6 = arith.constant 0 : index
    %9 = vector.load %arg3[%c0_5, %c0_6] : memref<32x128xf32, #tpu.memory_space<vmem>>, vector<32x128xf32>
    %cst_7 = arith.constant dense<0.000000e+00> : vector<1x128xf32>
    %10 = tpu.matmul %2, %9, %cst_7 {dimension_numbers = #tpu.dot_dimension_numbers<[1], [0], [0], [1], [0, 0, 1, 1], [], []>} : vector<1x32xf32>, vector<32x128xf32>, vector<1x128xf32> -> vector<1x128xf32>
    %11 = arith.addf %8, %10 : vector<1x128xf32>
    %12 = arith.negf %11 : vector<1x128xf32>
    %13 = math.exp %12 : vector<1x128xf32>
    %cst_8 = arith.constant 1.000000e+00 : f32
    %14 = vector.broadcast %cst_8 : f32 to vector<1x128xf32>
    %15 = arith.addf %14, %13 : vector<1x128xf32>
    %16 = arith.divf %14, %15 : vector<1x128xf32>
    %17 = vector.extract_strided_slice %16 {offsets = [0, 0], sizes = [1, 32], strides = [1, 1]} : vector<1x128xf32> to vector<1x32xf32>
    %18 = vector.extract_strided_slice %16 {offsets = [0, 32], sizes = [1, 32], strides = [1, 1]} : vector<1x128xf32> to vector<1x32xf32>
    %19 = vector.extract_strided_slice %11 {offsets = [0, 64], sizes = [1, 32], strides = [1, 1]} : vector<1x128xf32> to vector<1x32xf32>
    %20 = vector.extract_strided_slice %11 {offsets = [0, 96], sizes = [1, 32], strides = [1, 1]} : vector<1x128xf32> to vector<1x32xf32>
    %21 = arith.mulf %17, %20 : vector<1x32xf32>
    %22 = arith.addf %19, %21 : vector<1x32xf32>
    %23 = math.tanh %22 : vector<1x32xf32>
    %cst_9 = arith.constant 1.000000e+00 : f32
    %24 = vector.broadcast %cst_9 : f32 to vector<1x32xf32>
    %25 = arith.subf %24, %18 : vector<1x32xf32>
    %26 = arith.mulf %25, %23 : vector<1x32xf32>
    %27 = arith.mulf %18, %2 : vector<1x32xf32>
    %28 = arith.addf %26, %27 : vector<1x32xf32>
    %29 = arith.index_cast %c0_i32 : i32 to index
    %c0_10 = arith.constant 0 : index
    %30 = vector.load %arg9[%29, %c0_10] : memref<8x32xf32, #tpu.memory_space<vmem>>, vector<1x32xf32>
    tpu.vector_store %arg9[%29, %c0_10], %28 {strides = array<i32>} : memref<8x32xf32, #tpu.memory_space<vmem>>, vector<1x32xf32>,
    %c1_i32 = arith.constant 1 : i32
    %31 = arith.index_cast %c1_i32 : i32 to index
    %32 = memref.load %arg1[%31] : memref<8xi32, #tpu.memory_space<smem>>
    %c0_i32_11 = arith.constant 0 : i32
    %c15_i32_12 = arith.constant 15 : i32
    %33 = arith.maxsi %c0_i32_11, %32 : i32
    %34 = arith.minsi %c15_i32_12, %33 : i32
    %35 = arith.index_cast %34 : i32 to index
    %c0_13 = arith.constant 0 : index
    %36 = vector.load %arg2[%35, %c0_13] : memref<16x128xf32, #tpu.memory_space<vmem>>, vector<1x128xf32>
    %c0_14 = arith.constant 0 : index
    %c0_15 = arith.constant 0 : index
    %37 = vector.load %arg3[%c0_14, %c0_15] : memref<32x128xf32, #tpu.memory_space<vmem>>, vector<32x128xf32>
    %cst_16 = arith.constant dense<0.000000e+00> : vector<1x128xf32>
    %38 = tpu.matmul %28, %37, %cst_16 {dimension_numbers = #tpu.dot_dimension_numbers<[1], [0], [0], [1], [0, 0, 1, 1], [], []>} : vector<1x32xf32>, vector<32x128xf32>, vector<1x128xf32> -> vector<1x128xf32>
    %39 = arith.addf %36, %38 : vector<1x128xf32>
    %40 = arith.negf %39 : vector<1x128xf32>
    %41 = math.exp %40 : vector<1x128xf32>
    %cst_17 = arith.constant 1.000000e+00 : f32
    %42 = vector.broadcast %cst_17 : f32 to vector<1x128xf32>
    %43 = arith.addf %42, %41 : vector<1x128xf32>
    %44 = arith.divf %42, %43 : vector<1x128xf32>
    %45 = vector.extract_strided_slice %44 {offsets = [0, 0], sizes = [1, 32], strides = [1, 1]} : vector<1x128xf32> to vector<1x32xf32>
    %46 = vector.extract_strided_slice %44 {offsets = [0, 32], sizes = [1, 32], strides = [1, 1]} : vector<1x128xf32> to vector<1x32xf32>
    %47 = vector.extract_strided_slice %39 {offsets = [0, 64], sizes = [1, 32], strides = [1, 1]} : vector<1x128xf32> to vector<1x32xf32>
    %48 = vector.extract_strided_slice %39 {offsets = [0, 96], sizes = [1, 32], strides = [1, 1]} : vector<1x128xf32> to vector<1x32xf32>
    %49 = arith.mulf %45, %48 : vector<1x32xf32>
    %50 = arith.addf %47, %49 : vector<1x32xf32>
    %51 = math.tanh %50 : vector<1x32xf32>
    %cst_18 = arith.constant 1.000000e+00 : f32
    %52 = vector.broadcast %cst_18 : f32 to vector<1x32xf32>
    %53 = arith.subf %52, %46 : vector<1x32xf32>
    %54 = arith.mulf %53, %51 : vector<1x32xf32>
    %55 = arith.mulf %46, %28 : vector<1x32xf32>
    %56 = arith.addf %54, %55 : vector<1x32xf32>
    %57 = arith.index_cast %c1_i32 : i32 to index
    %c0_19 = arith.constant 0 : index
    %58 = vector.load %arg9[%57, %c0_19] : memref<8x32xf32, #tpu.memory_space<vmem>>, vector<1x32xf32>
    tpu.vector_store %arg9[%57, %c0_19], %56 {strides = array<i32>} : memref<8x32xf32, #tpu.memory_space<vmem>>, vector<1x32xf32>,
    %c2_i32 = arith.constant 2 : i32
    %59 = arith.index_cast %c2_i32 : i32 to index
    %60 = memref.load %arg1[%59] : memref<8xi32, #tpu.memory_space<smem>>
    %c0_i32_20 = arith.constant 0 : i32
    %c15_i32_21 = arith.constant 15 : i32
    %61 = arith.maxsi %c0_i32_20, %60 : i32
    %62 = arith.minsi %c15_i32_21, %61 : i32
    %63 = arith.index_cast %62 : i32 to index
    %c0_22 = arith.constant 0 : index
    %64 = vector.load %arg2[%63, %c0_22] : memref<16x128xf32, #tpu.memory_space<vmem>>, vector<1x128xf32>
    %c0_23 = arith.constant 0 : index
    %c0_24 = arith.constant 0 : index
    %65 = vector.load %arg3[%c0_23, %c0_24] : memref<32x128xf32, #tpu.memory_space<vmem>>, vector<32x128xf32>
    %cst_25 = arith.constant dense<0.000000e+00> : vector<1x128xf32>
    %66 = tpu.matmul %56, %65, %cst_25 {dimension_numbers = #tpu.dot_dimension_numbers<[1], [0], [0], [1], [0, 0, 1, 1], [], []>} : vector<1x32xf32>, vector<32x128xf32>, vector<1x128xf32> -> vector<1x128xf32>
    %67 = arith.addf %64, %66 : vector<1x128xf32>
    %68 = arith.negf %67 : vector<1x128xf32>
    %69 = math.exp %68 : vector<1x128xf32>
    %cst_26 = arith.constant 1.000000e+00 : f32
    %70 = vector.broadcast %cst_26 : f32 to vector<1x128xf32>
    %71 = arith.addf %70, %69 : vector<1x128xf32>
    %72 = arith.divf %70, %71 : vector<1x128xf32>
    %73 = vector.extract_strided_slice %72 {offsets = [0, 0], sizes = [1, 32], strides = [1, 1]} : vector<1x128xf32> to vector<1x32xf32>
    %74 = vector.extract_strided_slice %72 {offsets = [0, 32], sizes = [1, 32], strides = [1, 1]} : vector<1x128xf32> to vector<1x32xf32>
    %75 = vector.extract_strided_slice %67 {offsets = [0, 64], sizes = [1, 32], strides = [1, 1]} : vector<1x128xf32> to vector<1x32xf32>
    %76 = vector.extract_strided_slice %67 {offsets = [0, 96], sizes = [1, 32], strides = [1, 1]} : vector<1x128xf32> to vector<1x32xf32>
    %77 = arith.mulf %73, %76 : vector<1x32xf32>
    %78 = arith.addf %75, %77 : vector<1x32xf32>
    %79 = math.tanh %78 : vector<1x32xf32>
    %cst_27 = arith.constant 1.000000e+00 : f32
    %80 = vector.broadcast %cst_27 : f32 to vector<1x32xf32>
    %81 = arith.subf %80, %74 : vector<1x32xf32>
    %82 = arith.mulf %81, %79 : vector<1x32xf32>
    %83 = arith.mulf %74, %56 : vector<1x32xf32>
    %84 = arith.addf %82, %83 : vector<1x32xf32>
    %85 = arith.index_cast %c2_i32 : i32 to index
    %c0_28 = arith.constant 0 : index
    %86 = vector.load %arg9[%85, %c0_28] : memref<8x32xf32, #tpu.memory_space<vmem>>, vector<1x32xf32>
    tpu.vector_store %arg9[%85, %c0_28], %84 {strides = array<i32>} : memref<8x32xf32, #tpu.memory_space<vmem>>, vector<1x32xf32>,
    %c3_i32 = arith.constant 3 : i32
    %87 = arith.index_cast %c3_i32 : i32 to index
    %88 = memref.load %arg1[%87] : memref<8xi32, #tpu.memory_space<smem>>
    %c0_i32_29 = arith.constant 0 : i32
    %c15_i32_30 = arith.constant 15 : i32
    %89 = arith.maxsi %c0_i32_29, %88 : i32
    %90 = arith.minsi %c15_i32_30, %89 : i32
    %91 = arith.index_cast %90 : i32 to index
    %c0_31 = arith.constant 0 : index
    %92 = vector.load %arg2[%91, %c0_31] : memref<16x128xf32, #tpu.memory_space<vmem>>, vector<1x128xf32>
    %c0_32 = arith.constant 0 : index
    %c0_33 = arith.constant 0 : index
    %93 = vector.load %arg3[%c0_32, %c0_33] : memref<32x128xf32, #tpu.memory_space<vmem>>, vector<32x128xf32>
    %cst_34 = arith.constant dense<0.000000e+00> : vector<1x128xf32>
    %94 = tpu.matmul %84, %93, %cst_34 {dimension_numbers = #tpu.dot_dimension_numbers<[1], [0], [0], [1], [0, 0, 1, 1], [], []>} : vector<1x32xf32>, vector<32x128xf32>, vector<1x128xf32> -> vector<1x128xf32>
    %95 = arith.addf %92, %94 : vector<1x128xf32>
    %96 = arith.negf %95 : vector<1x128xf32>
    %97 = math.exp %96 : vector<1x128xf32>
    %cst_35 = arith.constant 1.000000e+00 : f32
    %98 = vector.broadcast %cst_35 : f32 to vector<1x128xf32>
    %99 = arith.addf %98, %97 : vector<1x128xf32>
    %100 = arith.divf %98, %99 : vector<1x128xf32>
    %101 = vector.extract_strided_slice %100 {offsets = [0, 0], sizes = [1, 32], strides = [1, 1]} : vector<1x128xf32> to vector<1x32xf32>
    %102 = vector.extract_strided_slice %100 {offsets = [0, 32], sizes = [1, 32], strides = [1, 1]} : vector<1x128xf32> to vector<1x32xf32>
    %103 = vector.extract_strided_slice %95 {offsets = [0, 64], sizes = [1, 32], strides = [1, 1]} : vector<1x128xf32> to vector<1x32xf32>
    %104 = vector.extract_strided_slice %95 {offsets = [0, 96], sizes = [1, 32], strides = [1, 1]} : vector<1x128xf32> to vector<1x32xf32>
    %105 = arith.mulf %101, %104 : vector<1x32xf32>
    %106 = arith.addf %103, %105 : vector<1x32xf32>
    %107 = math.tanh %106 : vector<1x32xf32>
    %cst_36 = arith.constant 1.000000e+00 : f32
    %108 = vector.broadcast %cst_36 : f32 to vector<1x32xf32>
    %109 = arith.subf %108, %102 : vector<1x32xf32>
    %110 = arith.mulf %109, %107 : vector<1x32xf32>
    %111 = arith.mulf %102, %84 : vector<1x32xf32>
    %112 = arith.addf %110, %111 : vector<1x32xf32>
    %113 = arith.index_cast %c3_i32 : i32 to index
    %c0_37 = arith.constant 0 : index
    %114 = vector.load %arg9[%113, %c0_37] : memref<8x32xf32, #tpu.memory_space<vmem>>, vector<1x32xf32>
    tpu.vector_store %arg9[%113, %c0_37], %112 {strides = array<i32>} : memref<8x32xf32, #tpu.memory_space<vmem>>, vector<1x32xf32>,
    %c4_i32 = arith.constant 4 : i32
    %115 = arith.index_cast %c4_i32 : i32 to index
    %116 = memref.load %arg1[%115] : memref<8xi32, #tpu.memory_space<smem>>
    %c0_i32_38 = arith.constant 0 : i32
    %c15_i32_39 = arith.constant 15 : i32
    %117 = arith.maxsi %c0_i32_38, %116 : i32
    %118 = arith.minsi %c15_i32_39, %117 : i32
    %119 = arith.index_cast %118 : i32 to index
    %c0_40 = arith.constant 0 : index
    %120 = vector.load %arg2[%119, %c0_40] : memref<16x128xf32, #tpu.memory_space<vmem>>, vector<1x128xf32>
    %c0_41 = arith.constant 0 : index
    %c0_42 = arith.constant 0 : index
    %121 = vector.load %arg3[%c0_41, %c0_42] : memref<32x128xf32, #tpu.memory_space<vmem>>, vector<32x128xf32>
    %cst_43 = arith.constant dense<0.000000e+00> : vector<1x128xf32>
    %122 = tpu.matmul %112, %121, %cst_43 {dimension_numbers = #tpu.dot_dimension_numbers<[1], [0], [0], [1], [0, 0, 1, 1], [], []>} : vector<1x32xf32>, vector<32x128xf32>, vector<1x128xf32> -> vector<1x128xf32>
    %123 = arith.addf %120, %122 : vector<1x128xf32>
    %124 = arith.negf %123 : vector<1x128xf32>
    %125 = math.exp %124 : vector<1x128xf32>
    %cst_44 = arith.constant 1.000000e+00 : f32
    %126 = vector.broadcast %cst_44 : f32 to vector<1x128xf32>
    %127 = arith.addf %126, %125 : vector<1x128xf32>
    %128 = arith.divf %126, %127 : vector<1x128xf32>
    %129 = vector.extract_strided_slice %128 {offsets = [0, 0], sizes = [1, 32], strides = [1, 1]} : vector<1x128xf32> to vector<1x32xf32>
    %130 = vector.extract_strided_slice %128 {offsets = [0, 32], sizes = [1, 32], strides = [1, 1]} : vector<1x128xf32> to vector<1x32xf32>
    %131 = vector.extract_strided_slice %123 {offsets = [0, 64], sizes = [1, 32], strides = [1, 1]} : vector<1x128xf32> to vector<1x32xf32>
    %132 = vector.extract_strided_slice %123 {offsets = [0, 96], sizes = [1, 32], strides = [1, 1]} : vector<1x128xf32> to vector<1x32xf32>
    %133 = arith.mulf %129, %132 : vector<1x32xf32>
    %134 = arith.addf %131, %133 : vector<1x32xf32>
    %135 = math.tanh %134 : vector<1x32xf32>
    %cst_45 = arith.constant 1.000000e+00 : f32
    %136 = vector.broadcast %cst_45 : f32 to vector<1x32xf32>
    %137 = arith.subf %136, %130 : vector<1x32xf32>
    %138 = arith.mulf %137, %135 : vector<1x32xf32>
    %139 = arith.mulf %130, %112 : vector<1x32xf32>
    %140 = arith.addf %138, %139 : vector<1x32xf32>
    %141 = arith.index_cast %c4_i32 : i32 to index
    %c0_46 = arith.constant 0 : index
    %142 = vector.load %arg9[%141, %c0_46] : memref<8x32xf32, #tpu.memory_space<vmem>>, vector<1x32xf32>
    tpu.vector_store %arg9[%141, %c0_46], %140 {strides = array<i32>} : memref<8x32xf32, #tpu.memory_space<vmem>>, vector<1x32xf32>,
    %c5_i32 = arith.constant 5 : i32
    %143 = arith.index_cast %c5_i32 : i32 to index
    %144 = memref.load %arg1[%143] : memref<8xi32, #tpu.memory_space<smem>>
    %c0_i32_47 = arith.constant 0 : i32
    %c15_i32_48 = arith.constant 15 : i32
    %145 = arith.maxsi %c0_i32_47, %144 : i32
    %146 = arith.minsi %c15_i32_48, %145 : i32
    %147 = arith.index_cast %146 : i32 to index
    %c0_49 = arith.constant 0 : index
    %148 = vector.load %arg2[%147, %c0_49] : memref<16x128xf32, #tpu.memory_space<vmem>>, vector<1x128xf32>
    %c0_50 = arith.constant 0 : index
    %c0_51 = arith.constant 0 : index
    %149 = vector.load %arg3[%c0_50, %c0_51] : memref<32x128xf32, #tpu.memory_space<vmem>>, vector<32x128xf32>
    %cst_52 = arith.constant dense<0.000000e+00> : vector<1x128xf32>
    %150 = tpu.matmul %140, %149, %cst_52 {dimension_numbers = #tpu.dot_dimension_numbers<[1], [0], [0], [1], [0, 0, 1, 1], [], []>} : vector<1x32xf32>, vector<32x128xf32>, vector<1x128xf32> -> vector<1x128xf32>
    %151 = arith.addf %148, %150 : vector<1x128xf32>
    %152 = arith.negf %151 : vector<1x128xf32>
    %153 = math.exp %152 : vector<1x128xf32>
    %cst_53 = arith.constant 1.000000e+00 : f32
    %154 = vector.broadcast %cst_53 : f32 to vector<1x128xf32>
    %155 = arith.addf %154, %153 : vector<1x128xf32>
    %156 = arith.divf %154, %155 : vector<1x128xf32>
    %157 = vector.extract_strided_slice %156 {offsets = [0, 0], sizes = [1, 32], strides = [1, 1]} : vector<1x128xf32> to vector<1x32xf32>
    %158 = vector.extract_strided_slice %156 {offsets = [0, 32], sizes = [1, 32], strides = [1, 1]} : vector<1x128xf32> to vector<1x32xf32>
    %159 = vector.extract_strided_slice %151 {offsets = [0, 64], sizes = [1, 32], strides = [1, 1]} : vector<1x128xf32> to vector<1x32xf32>
    %160 = vector.extract_strided_slice %151 {offsets = [0, 96], sizes = [1, 32], strides = [1, 1]} : vector<1x128xf32> to vector<1x32xf32>
    %161 = arith.mulf %157, %160 : vector<1x32xf32>
    %162 = arith.addf %159, %161 : vector<1x32xf32>
    %163 = math.tanh %162 : vector<1x32xf32>
    %cst_54 = arith.constant 1.000000e+00 : f32
    %164 = vector.broadcast %cst_54 : f32 to vector<1x32xf32>
    %165 = arith.subf %164, %158 : vector<1x32xf32>
    %166 = arith.mulf %165, %163 : vector<1x32xf32>
    %167 = arith.mulf %158, %140 : vector<1x32xf32>
    %168 = arith.addf %166, %167 : vector<1x32xf32>
    %169 = arith.index_cast %c5_i32 : i32 to index
    %c0_55 = arith.constant 0 : index
    %170 = vector.load %arg9[%169, %c0_55] : memref<8x32xf32, #tpu.memory_space<vmem>>, vector<1x32xf32>
    tpu.vector_store %arg9[%169, %c0_55], %168 {strides = array<i32>} : memref<8x32xf32, #tpu.memory_space<vmem>>, vector<1x32xf32>,
    %c6_i32 = arith.constant 6 : i32
    %171 = arith.index_cast %c6_i32 : i32 to index
    %172 = memref.load %arg1[%171] : memref<8xi32, #tpu.memory_space<smem>>
    %c0_i32_56 = arith.constant 0 : i32
    %c15_i32_57 = arith.constant 15 : i32
    %173 = arith.maxsi %c0_i32_56, %172 : i32
    %174 = arith.minsi %c15_i32_57, %173 : i32
    %175 = arith.index_cast %174 : i32 to index
    %c0_58 = arith.constant 0 : index
    %176 = vector.load %arg2[%175, %c0_58] : memref<16x128xf32, #tpu.memory_space<vmem>>, vector<1x128xf32>
    %c0_59 = arith.constant 0 : index
    %c0_60 = arith.constant 0 : index
    %177 = vector.load %arg3[%c0_59, %c0_60] : memref<32x128xf32, #tpu.memory_space<vmem>>, vector<32x128xf32>
    %cst_61 = arith.constant dense<0.000000e+00> : vector<1x128xf32>
    %178 = tpu.matmul %168, %177, %cst_61 {dimension_numbers = #tpu.dot_dimension_numbers<[1], [0], [0], [1], [0, 0, 1, 1], [], []>} : vector<1x32xf32>, vector<32x128xf32>, vector<1x128xf32> -> vector<1x128xf32>
    %179 = arith.addf %176, %178 : vector<1x128xf32>
    %180 = arith.negf %179 : vector<1x128xf32>
    %181 = math.exp %180 : vector<1x128xf32>
    %cst_62 = arith.constant 1.000000e+00 : f32
    %182 = vector.broadcast %cst_62 : f32 to vector<1x128xf32>
    %183 = arith.addf %182, %181 : vector<1x128xf32>
    %184 = arith.divf %182, %183 : vector<1x128xf32>
    %185 = vector.extract_strided_slice %184 {offsets = [0, 0], sizes = [1, 32], strides = [1, 1]} : vector<1x128xf32> to vector<1x32xf32>
    %186 = vector.extract_strided_slice %184 {offsets = [0, 32], sizes = [1, 32], strides = [1, 1]} : vector<1x128xf32> to vector<1x32xf32>
    %187 = vector.extract_strided_slice %179 {offsets = [0, 64], sizes = [1, 32], strides = [1, 1]} : vector<1x128xf32> to vector<1x32xf32>
    %188 = vector.extract_strided_slice %179 {offsets = [0, 96], sizes = [1, 32], strides = [1, 1]} : vector<1x128xf32> to vector<1x32xf32>
    %189 = arith.mulf %185, %188 : vector<1x32xf32>
    %190 = arith.addf %187, %189 : vector<1x32xf32>
    %191 = math.tanh %190 : vector<1x32xf32>
    %cst_63 = arith.constant 1.000000e+00 : f32
    %192 = vector.broadcast %cst_63 : f32 to vector<1x32xf32>
    %193 = arith.subf %192, %186 : vector<1x32xf32>
    %194 = arith.mulf %193, %191 : vector<1x32xf32>
    %195 = arith.mulf %186, %168 : vector<1x32xf32>
    %196 = arith.addf %194, %195 : vector<1x32xf32>
    %197 = arith.index_cast %c6_i32 : i32 to index
    %c0_64 = arith.constant 0 : index
    %198 = vector.load %arg9[%197, %c0_64] : memref<8x32xf32, #tpu.memory_space<vmem>>, vector<1x32xf32>
    tpu.vector_store %arg9[%197, %c0_64], %196 {strides = array<i32>} : memref<8x32xf32, #tpu.memory_space<vmem>>, vector<1x32xf32>,
    %c7_i32 = arith.constant 7 : i32
    %199 = arith.index_cast %c7_i32 : i32 to index
    %200 = memref.load %arg1[%199] : memref<8xi32, #tpu.memory_space<smem>>
    %c0_i32_65 = arith.constant 0 : i32
    %c15_i32_66 = arith.constant 15 : i32
    %201 = arith.maxsi %c0_i32_65, %200 : i32
    %202 = arith.minsi %c15_i32_66, %201 : i32
    %203 = arith.index_cast %202 : i32 to index
    %c0_67 = arith.constant 0 : index
    %204 = vector.load %arg2[%203, %c0_67] : memref<16x128xf32, #tpu.memory_space<vmem>>, vector<1x128xf32>
    %c0_68 = arith.constant 0 : index
    %c0_69 = arith.constant 0 : index
    %205 = vector.load %arg3[%c0_68, %c0_69] : memref<32x128xf32, #tpu.memory_space<vmem>>, vector<32x128xf32>
    %cst_70 = arith.constant dense<0.000000e+00> : vector<1x128xf32>
    %206 = tpu.matmul %196, %205, %cst_70 {dimension_numbers = #tpu.dot_dimension_numbers<[1], [0], [0], [1], [0, 0, 1, 1], [], []>} : vector<1x32xf32>, vector<32x128xf32>, vector<1x128xf32> -> vector<1x128xf32>
    %207 = arith.addf %204, %206 : vector<1x128xf32>
    %208 = arith.negf %207 : vector<1x128xf32>
    %209 = math.exp %208 : vector<1x128xf32>
    %cst_71 = arith.constant 1.000000e+00 : f32
    %210 = vector.broadcast %cst_71 : f32 to vector<1x128xf32>
    %211 = arith.addf %210, %209 : vector<1x128xf32>
    %212 = arith.divf %210, %211 : vector<1x128xf32>
    %213 = vector.extract_strided_slice %212 {offsets = [0, 0], sizes = [1, 32], strides = [1, 1]} : vector<1x128xf32> to vector<1x32xf32>
    %214 = vector.extract_strided_slice %212 {offsets = [0, 32], sizes = [1, 32], strides = [1, 1]} : vector<1x128xf32> to vector<1x32xf32>
    %215 = vector.extract_strided_slice %207 {offsets = [0, 64], sizes = [1, 32], strides = [1, 1]} : vector<1x128xf32> to vector<1x32xf32>
    %216 = vector.extract_strided_slice %207 {offsets = [0, 96], sizes = [1, 32], strides = [1, 1]} : vector<1x128xf32> to vector<1x32xf32>
    %217 = arith.mulf %213, %216 : vector<1x32xf32>
    %218 = arith.addf %215, %217 : vector<1x32xf32>
    %219 = math.tanh %218 : vector<1x32xf32>
    %cst_72 = arith.constant 1.000000e+00 : f32
    %220 = vector.broadcast %cst_72 : f32 to vector<1x32xf32>
    %221 = arith.subf %220, %214 : vector<1x32xf32>
    %222 = arith.mulf %221, %219 : vector<1x32xf32>
    %223 = arith.mulf %214, %196 : vector<1x32xf32>
    %224 = arith.addf %222, %223 : vector<1x32xf32>
    %225 = arith.index_cast %c7_i32 : i32 to index
    %c0_73 = arith.constant 0 : index
    %226 = vector.load %arg9[%225, %c0_73] : memref<8x32xf32, #tpu.memory_space<vmem>>, vector<1x32xf32>
    tpu.vector_store %arg9[%225, %c0_73], %224 {strides = array<i32>} : memref<8x32xf32, #tpu.memory_space<vmem>>, vector<1x32xf32>,
    %c8_i32 = arith.constant 8 : i32
    %c0_74 = arith.constant 0 : index
    %c0_75 = arith.constant 0 : index
    %227 = vector.load %arg8[%c0_74, %c0_75] : memref<1x32xf32, #tpu.memory_space<vmem>>, vector<1x32xf32>
    tpu.vector_store %arg8[%c0_74, %c0_75], %224 {strides = array<i32>} : memref<1x32xf32, #tpu.memory_space<vmem>>, vector<1x32xf32>,
    %c0_76 = arith.constant 0 : index
    %c0_77 = arith.constant 0 : index
    %228 = vector.load %arg9[%c0_76, %c0_77] : memref<8x32xf32, #tpu.memory_space<vmem>>, vector<8x32xf32>
    %c0_78 = arith.constant 0 : index
    %c0_79 = arith.constant 0 : index
    %229 = vector.load %arg4[%c0_78, %c0_79] : memref<32x128xf32, #tpu.memory_space<vmem>>, vector<32x128xf32>
    %cst_80 = arith.constant dense<0.000000e+00> : vector<8x128xf32>
    %230 = tpu.matmul %228, %229, %cst_80 {dimension_numbers = #tpu.dot_dimension_numbers<[1], [0], [0], [1], [0, 0, 1, 1], [], []>} : vector<8x32xf32>, vector<32x128xf32>, vector<8x128xf32> -> vector<8x128xf32>
    %c0_81 = arith.constant 0 : index
    %c0_82 = arith.constant 0 : index
    %231 = vector.load %arg5[%c0_81, %c0_82] : memref<1x128xf32, #tpu.memory_space<vmem>>, vector<1x128xf32>
    %232 = vector.broadcast %231 : vector<1x128xf32> to vector<8x128xf32>
    %233 = arith.addf %230, %232 : vector<8x128xf32>
    %cst_83 = arith.constant dense<0xFF800000> : vector<8xf32>
    %234 = vector.multi_reduction <maximumf>, %233, %cst_83 [1] : vector<8x128xf32> to vector<8xf32>
    %235 = vector.shape_cast %234 : vector<8xf32> to vector<8x1xf32>
    %236 = vector.broadcast %235 : vector<8x1xf32> to vector<8x128xf32>
    %237 = arith.subf %233, %236 : vector<8x128xf32>
    %238 = math.exp %237 : vector<8x128xf32>
    %cst_84 = arith.constant dense<0.000000e+00> : vector<8xf32>
    %239 = vector.multi_reduction <add>, %238, %cst_84 [1] : vector<8x128xf32> to vector<8xf32>
    %240 = vector.shape_cast %239 : vector<8xf32> to vector<8x1xf32>
    %241 = math.log %240 : vector<8x1xf32>
    %242 = vector.broadcast %241 : vector<8x1xf32> to vector<8x128xf32>
    %243 = arith.subf %237, %242 : vector<8x128xf32>
    %c0_85 = arith.constant 0 : index
    %c0_86 = arith.constant 0 : index
    %244 = vector.load %arg7[%c0_85, %c0_86] : memref<8x128xf32, #tpu.memory_space<vmem>>, vector<8x128xf32>
    tpu.vector_store %arg7[%c0_85, %c0_86], %243 {strides = array<i32>} : memref<8x128xf32, #tpu.memory_space<vmem>>, vector<8x128xf32>,
    return
  }
  func.func @transform_0(%arg0: i32, %arg1: memref<8xi32, #tpu.memory_space<smem>>) -> (i32, i32) {
    %c0_i32 = arith.constant 0 : i32
    %c0_i32_0 = arith.constant 0 : i32
    %c0_i32_1 = arith.constant 0 : i32
    return %c0_i32, %c0_i32_0 : i32, i32
  }
  func.func @transform_1(%arg0: i32, %arg1: memref<8xi32, #tpu.memory_space<smem>>) -> (i32, i32) {
    %c0_i32 = arith.constant 0 : i32
    %c0_i32_0 = arith.constant 0 : i32
    %c0_i32_1 = arith.constant 0 : i32
    return %c0_i32, %c0_i32_0 : i32, i32
  }
  func.func @transform_2(%arg0: i32, %arg1: memref<8xi32, #tpu.memory_space<smem>>) -> (i32, i32) {
    %c0_i32 = arith.constant 0 : i32
    %c0_i32_0 = arith.constant 0 : i32
    %c0_i32_1 = arith.constant 0 : i32
    return %c0_i32, %c0_i32_0 : i32, i32
  }
  func.func @transform_3(%arg0: i32, %arg1: memref<8xi32, #tpu.memory_space<smem>>) -> (i32, i32) {
    %c0_i32 = arith.constant 0 : i32
    %c0_i32_0 = arith.constant 0 : i32
    %c0_i32_1 = arith.constant 0 : i32
    return %c0_i32, %c0_i32_0 : i32, i32
  }
  func.func @transform_4(%arg0: i32, %arg1: memref<8xi32, #tpu.memory_space<smem>>) -> (i32, i32) {
    %c0_i32 = arith.constant 0 : i32
    %c0_i32_0 = arith.constant 0 : i32
    %c0_i32_1 = arith.constant 0 : i32
    return %c0_i32, %c0_i32_0 : i32, i32
  }
  func.func @transform_5(%arg0: i32, %arg1: memref<8xi32, #tpu.memory_space<smem>>) -> (i32, i32) {
    %c0_i32 = arith.constant 0 : i32
    %c0_i32_0 = arith.constant 0 : i32
    %c0_i32_1 = arith.constant 0 : i32
    return %c0_i32, %c0_i32_0 : i32, i32
  }
  func.func @transform_6(%arg0: i32, %arg1: memref<8xi32, #tpu.memory_space<smem>>) -> (i32, i32) {
    %c0_i32 = arith.constant 0 : i32
    %c0_i32_0 = arith.constant 0 : i32
    %c0_i32_1 = arith.constant 0 : i32
    return %c0_i32, %c0_i32_0 : i32, i32
  }
}

</mosaic_0001>

<bundles_post_ra>
// kernel: decoder_rnn_decode.1
= control target key start
LH: loop header
LB: loop body
LE: loop exit
PB: predicated region body
PF: predicated region fallthrough
CT: control target
= control target key end

     0   :  { %s1856_s0 = inlined_call_operand.vmem [shape: s32[8], index: 0, kind: input, shape index: {}]   ;;  %s1857_s1 = inlined_call_operand.hbm [shape: f32[16,128], index: 1, kind: input, shape index: {}]   ;;  %s1858_s2 = inlined_call_operand.hbm [shape: f32[32,128], index: 2, kind: input, shape index: {}]   ;;  %s1859_s3 = inlined_call_operand.hbm [shape: f32[32,128], index: 3, kind: input, shape index: {}]   ;;  %s1860_s4 = inlined_call_operand.vmem [shape: f32[1,128], index: 4, kind: input, shape index: {}]   ;;  %s1861_s5 = inlined_call_operand.vmem [shape: f32[1,32], index: 5, kind: input, shape index: {}]   ;;  %s1862_s6 = inlined_call_operand.hbm [shape: f32[8,128], index: 6, kind: output, shape index: {0}]   ;;  %s1863_s7 = inlined_call_operand.hbm [shape: f32[1,32], index: 7, kind: output, shape index: {1}]  }
   0x1   :  { %s13_s26 = sshll.u32 %s1856_s0, 4  ;;  %s14_s26 = int_to_ptr.vmem [resolvable:$true] %s13_s26 }
   0x2   :  { %s1476_s27 = scalar_lea.vmem %s14_s26, 16  ;;  %p1481_p1 = scmp.lt.s32.totalorder %s14_s26, %s14_s26 }
   0x3   :  { %p1477_p0 = scmp.ne.s32.totalorder %s14_s26, %s1476_s27  ;;  %p1482_p2 = scmp.lt.s32.totalorder %s1476_s27, %s1476_s27 }
   0x5   :  { %p1483_p3 = por %p1482_p2, %p1481_p1 }
   0x7   :  { %p1484_p4 = pnand %p1483_p3, %p1477_p0 }
   0x9   :  { %1487 = shalt.err (!%p1484_p4)  }
   0xa   :  { %s1608_s28 = smov [#allocation4]  }
   0xb   :  { %16 = dma.vmem_to_smem %s14_s26, 16, %s1608_s28, [#allocation3] }
   0xc   :  { %1598 = dma.done.wait [#allocation3], 16 }
   0xd   :  { %1599 = vsyncadd [#allocation3], 4294967280 }
   0xe   :  { %18 = sfence }
   0xf   :  { %19 = vsyncpa [#allocation6], 0 }
  0x10   :  { %20 = vsyncpa [#allocation9], 0 }
  0x11   :  { %21 = vsyncpa [#allocation7], 0 }
  0x12   :  { %22 = vsyncpa [#allocation13], 0  ;;  %s1609_s29 = smov [#allocation8]   ;;  %s1610_s0 = smov [#allocation5]  }
  0x13   :  { %s40_s30 = sshll.u32 %s1609_s29, 4  ;;  %s28_s8 = sshll.u32 %s1610_s0, 4  ;;  %s41_s30 = int_to_ptr.vmem [resolvable:$true] %s40_s30  ;;  %s1665_s8 = int_to_ptr.vmem [resolvable:$true] %s28_s8 }
  0x14   :  { %s1488_s11 = scalar_lea.hbm %s1858_s2, 512 }
  0x15   :  { %p1489_p5 = scmp.ne.s32.totalorder %s1858_s2, %s1488_s11  ;;  %p1492_p6 = scmp.lt.u32.totalorder %s1488_s11, %s1858_s2 }
  0x17   :  { %p1494_p7 = pnand %p1492_p6, %p1489_p5 }
  0x19   :  { %1497 = shalt.err (!%p1494_p7)
}
  0x1a   :  { %s1498_s16 = scalar_lea.vmem %s41_s30, 512  ;;  %p1503_p9 = scmp.lt.s32.totalorder %s41_s30, %s41_s30 }
  0x1b   :  { %p1499_p8 = scmp.ne.s32.totalorder %s41_s30, %s1498_s16  ;;  %p1504_p10 = scmp.lt.s32.totalorder %s1498_s16, %s1498_s16 }
  0x1d   :  { %p1505_p11 = por %p1504_p10, %p1503_p9 }
  0x1f   :  { %p1506_p12 = pnand %p1505_p11, %p1499_p8 }
  0x21   :  { %1509 = shalt.err (!%p1506_p12)
}
  0x22   :  { %s1611_s17 = smov 128   ;;  %s1612_s18 = smov 8  }
  0x23   :  { %46 = dma.hbm_to_vmem [thread:$0]  %s1858_s2, 512, %s41_s30, [#allocation9], %s1611_s17, %s1611_s17, %s1612_s18  }
  0x24   :  { %s1510_s23 = scalar_lea.hbm %s1857_s1, 256 }
  0x25   :  { %p1511_p13 = scmp.ne.s32.totalorder %s1857_s1, %s1510_s23  ;;  %p1514_p0 = scmp.lt.u32.totalorder %s1510_s23, %s1857_s1 }
  0x27   :  { %p1516_p1 = pnand %p1514_p0, %p1511_p13 }
  0x29   :  { %1519 = shalt.err (!%p1516_p1)
}
  0x2a   :  { %s1520_s28 = scalar_lea.vmem %s1665_s8, 256  ;;  %p1525_p3 = scmp.lt.s32.totalorder %s1665_s8, %s1665_s8 }
  0x2b   :  { %p1521_p2 = scmp.ne.s32.totalorder %s1665_s8, %s1520_s28  ;;  %p1526_p4 = scmp.lt.s32.totalorder %s1520_s28, %s1520_s28 }
  0x2d   :  { %p1527_p5 = por %p1526_p4, %p1525_p3 }
  0x2f   :  { %p1528_p6 = pnand %p1527_p5, %p1521_p2 }
  0x31   :  { %1531 = shalt.err (!%p1528_p6)
}
  0x32   :  { %34 = dma.hbm_to_vmem [thread:$0]  %s1857_s1, 256, %s1665_s8, [#allocation6], %s1611_s17, %s1611_s17, %s1612_s18  }
  0x33   :  { %s1613_s30 = smov [#allocation10]   ;;  %s1532_s11 = scalar_lea.hbm %s1859_s3, 512 }
  0x34   :  { %s52_s0 = sshll.u32 %s1613_s30, 4  ;;  %p1533_p7 = scmp.ne.s32.totalorder %s1859_s3, %s1532_s11  ;;  %s53_s0 = int_to_ptr.vmem [resolvable:$true] %s52_s0 }
  0x35   :  { %p1536_p8 = scmp.lt.u32.totalorder %s1532_s11, %s1859_s3 }
  0x37   :  { %p1538_p9 = pnand %p1536_p8, %p1533_p7 }
  0x39   :  { %1541 = shalt.err (!%p1538_p9)
}
  0x3a   :  { %s1542_s16 = scalar_lea.vmem %s53_s0, 512  ;;  %p1547_p11 = scmp.lt.s32.totalorder %s53_s0, %s53_s0 }
  0x3b   :  { %p1543_p10 = scmp.ne.s32.totalorder %s53_s0, %s1542_s16  ;;  %p1548_p12 = scmp.lt.s32.totalorder %s1542_s16, %s1542_s16 }
  0x3d   :  { %p1549_p13 = por %p1548_p12, %p1547_p11 }
  0x3f   :  { %p1550_p0 = pnand %p1549_p13, %p1543_p10 }
  0x41   :  { %1553 = shalt.err (!%p1550_p0)
}
  0x42   :  { %58 = dma.hbm_to_vmem [thread:$0]  %s1859_s3, 512, %s53_s0, [#allocation9], %s1611_s17, %s1611_s17, %s1612_s18  }
  0x43   :  { %1600 = dma.done.wait [#allocation6], 256  }
  0x44   :  { %1601 = vsyncadd [#allocation6], 4294967040 }
  0x45   :  { %1602 = dma.done.wait [#allocation9], 1024  }
  0x46   :  { %1603 = vsyncadd [#allocation9], 4294966272  ;;  %vm72_vm0 = vcmask 261120   ;;  %v1614_v0 = vmov 0.0|0.0   ;;  %vm1615_vm1 = vmmov 0   ;;  %v1616_v1 = vmov 0.0  }
  0x47   :  { %1356 = vmatprep.subr.bf16.mxu0 %v1614_v0  ;;  %1265 = vmatprep.mubr.msk.f32.mxu0 %vm1615_vm1, %v1616_v1  ;;  %73 = vst.msk [vmem:[#allocation2] sm:$0xff] %vm72_vm0, %v1616_v1  ;;  %v82_v2 = vld [vmem:[#allocation8] sm:$0xff]  ;;  %v83_v3 = vld [vmem:[#allocation8 + $0x8] sm:$0xff]  ;;  %v84_v4 = vld [vmem:[#allocation8 + $0x10] sm:$0xff]  ;;  %s1617_s19 = smov 32   ;;  %s1618_s20 = smov 64   ;;  %v183_v21 = vlaneseq }
  0x48   :  { %1362 = vmatprep.subr.bf16.mxu1 %v1614_v0  ;;  %1276 = vmatprep.mubr.msk.f32.mxu1 %vm1615_vm1, %v1616_v1  ;;  %v1725_v5 = vpack.c.bf16 %v83_v3, %v82_v2  ;;  %v85_v6 = vld [vmem:[#allocation8 + $0x18] sm:$0xff]  ;;  %v74_v8 = vld [vmem:[%s1861_s5] sm:$0x1]  ;;  %s75_s5 = sld [smem:[#allocation4]]  ;;  %s1619_s21 = smov 96   ;;  %vm196_vm2 = vcmask 253952  }
  0x49   :  { %v1728_v7 = vpack.c.bf16 %v85_v6, %v84_v4  ;;  %v184_v22 = vshrl.u32 %v183_v21, 7  ;;  %s1138_s22 = sld [smem:[#allocation4 + $0x1]]  ;;  %s1146_s24 = sld [smem:[#allocation4 + $0x2]] }
  0x4a   :  { %1358 = vmatpush3.bf16.msra.mxu0 %v1725_v5  ;;  %1364 = vmatpush3.bf16.msra.mxu1 %v1725_v5  ;;  %s1154_s26 = sld [smem:[#allocation4 + $0x3]]  ;;  %s1162_s28 = sld [smem:[#allocation4 + $0x4]] }
  0x4b   :  { %1359 = vmatprep.subr.bf16.mxu0 %v1614_v0  ;;  %1365 = vmatprep.subr.bf16.mxu1 %v1614_v0  ;;  %v185_v23 = vsub.s32 0, %v184_v22  ;;  %s1170_s29 = sld [smem:[#allocation4 + $0x5]]  ;;  %s1178_s0 = sld [smem:[#allocation4 + $0x6]] }
  0x4c   :  { %s1186_s10 = sld [smem:[#allocation4 + $0x7]]  ;;  %s1620_s14 = smov [#allocation12]  }
  0x4d   :  { %v186_v25 = vrot.slane %v74_v8, %v185_v23  ;;  %s1109_s15 = sshll.u32 %s1620_s14, 4  ;;  %s1110_s15 = int_to_ptr.vmem [resolvable:$true] %s1109_s15 }
  0x4e   :  { %1361 = vmatpush3.bf16.msra.mxu0 %v1728_v7  ;;  %1367 = vmatpush3.bf16.msra.mxu1 %v1728_v7  ;;  %p76_p1 = scmp.gt.s32.totalorder %s75_s5, 0  ;;  %p1131_p2 = scmp.lt.s32.totalorder %s75_s5, 15 }
  0x4f   :  { %1368 = vmatprep.subr.bf16.mxu0 %v1614_v0  ;;  %1374 = vmatprep.subr.bf16.mxu1 %v1614_v0  ;;  %p199_p3 = scmp.gt.s32.totalorder %s1138_s22, 0  ;;  %p1139_p4 = scmp.lt.s32.totalorder %s1138_s22, 15 }
  0x50   :  { %s1865_s5 = smov (!%p76_p1, %s75_s5), 0  ;;  %p313_p5 = scmp.gt.s32.totalorder %s1146_s24, 0 }
  0x51   :  { %1266 = vmatmul.mubr.msk.f32.vlgmr.msra.gmra.mrb[0].mxu0 %vm72_vm0, %v74_v8  ;;  %s1867_s5 = smov (!%p1131_p2, %s1865_s5), 15  ;;  %s1869_s22 = smov (!%p199_p3, %s1138_s22), 0 }
  0x52   :  { %1370 = vmatpush3.bf16.msra.mxu0 %v1725_v5  ;;  %1287 = vmatprep.mubr.msk.f32.mxu0 %vm1615_vm1, %v1616_v1  ;;  %s80_s18 = scalar_lea.vmem [#allocation5], %s1867_s5  ;;  %s1871_s22 = smov (!%p1139_p4, %s1869_s22), 15 }
  0x53   :  { %1371 = vmatprep.subr.bf16.mxu0 %v1614_v0  ;;  %v81_v9 = vld [vmem:[%s80_s18] sm:$0x1]  ;;  %s203_s23 = scalar_lea.vmem [#allocation5], %s1871_s22  ;;  %p1147_p6 = scmp.lt.s32.totalorder %s1146_s24, 15 }
  0x54   :  { %v204_v33 = vld [vmem:[%s203_s23] sm:$0x1]  ;;  %s1873_s24 = smov (!%p313_p5, %s1146_s24), 0  ;;  %p427_p7 = scmp.gt.s32.totalorder %s1154_s26, 0 }
  0x55   :  { %s1875_s24 = smov (!%p1147_p6, %s1873_s24), 15  ;;  %p1155_p8 = scmp.lt.s32.totalorder %s1154_s26, 15 }
  0x56   :  { %1373 = vmatpush3.bf16.msra.mxu0 %v1728_v7  ;;  %s317_s25 = scalar_lea.vmem [#allocation5], %s1875_s24  ;;  %s1877_s26 = smov (!%p427_p7, %s1154_s26), 0 }
  0x57   :  { %1380 = vmatprep.subr.bf16.mxu0 %v1614_v0  ;;  %v318_v52 = vld [vmem:[%s317_s25] sm:$0x1]  ;;  %s1879_s26 = smov (!%p1155_p8, %s1877_s26), 15  ;;  %p541_p9 = scmp.gt.s32.totalorder %s1162_s28, 0 }
  0x58   :  { %s431_s27 = scalar_lea.vmem [#allocation5], %s1879_s26  ;;  %p1163_p10 = scmp.lt.s32.totalorder %s1162_s28, 15 }
  0x59   :  { %s1881_s28 = smov (!%p541_p9, %s1162_s28), 0  ;;  %p655_p11 = scmp.gt.s32.totalorder %s1170_s29, 0 }
  0x5a   :  { %s1883_s28 = smov (!%p1163_p10, %s1881_s28), 15  ;;  %p1171_p12 = scmp.lt.s32.totalorder %s1170_s29, 15 }
  0x5b   :  { %s545_s2 = scalar_lea.vmem [#allocation5], %s1883_s28  ;;  %s1885_s29 = smov (!%p655_p11, %s1170_s29), 0 }
  0x5c   :  { %s1887_s29 = smov (!%p1171_p12, %s1885_s29), 15  ;;  %p769_p13 = scmp.gt.s32.totalorder %s1178_s0, 0 }
  0x5d   :  { %s659_s30 = scalar_lea.vmem [#allocation5], %s1887_s29  ;;  %p1179_p0 = scmp.lt.s32.totalorder %s1178_s0, 15 }
  0x5e   :  { %s1889_s0 = smov (!%p769_p13, %s1178_s0), 0  ;;  %p883_p1 = scmp.gt.s32.totalorder %s1186_s10, 0 }
  0x5f   :  { %s1891_s0 = smov (!%p1179_p0, %s1889_s0), 15  ;;  %p1187_p2 = scmp.lt.s32.totalorder %s1186_s10, 15 }
  0x60   :  { %s773_s9 = scalar_lea.vmem [#allocation5], %s1891_s0  ;;  %s1893_s10 = smov (!%p883_p1, %s1186_s10), 0 }
  0x61   :  { %s1895_s10 = smov (!%p1187_p2, %s1893_s10), 15  ;;  %s1554_s16 = scalar_lea.vmem %s1110_s15, 16 }
  0x62   :  { %s887_s11 = scalar_lea.vmem [#allocation5], %s1895_s10  ;;  %p1555_p3 = scmp.ne.s32.totalorder %s1110_s15, %s1554_s16 }
  0x63   :  { %s1558_s1 = scalar_lea.vmem %s1110_s15, 32  ;;  %p1559_p4 = scmp.lt.s32.totalorder %s1110_s15, %s1110_s15 }
  0x64   :  { %p1560_p5 = scmp.lt.s32.totalorder %s1558_s1, %s1554_s16 }
  0x66   :  { %p1561_p6 = por %p1560_p5, %p1559_p4 }
  0x68   :  { %p1562_p7 = pnand %p1561_p6, %p1555_p3 }
 0x124   :  { %v155_v10 = vpop.f32.mrb[0].mxu0 }
 0x125   :  { %v159_v11 = vadd.f32 %v155_v10, %v81_v9  ;;  %v1267_v12 = vpop.f32.mrb[1].mxu0 }
 0x127   :  { %167 = vrot.lane.b32.xlu0 %v159_v11, %s1617_s19  ;;  %v1137_v13 = vmul.f32 -1.442695, %v159_v11 }
 0x129   :  { %1424 = vpow2.f32 %v1137_v13 }
 0x133   :  { %v1425_v14 = vpop.eup %1424 }
 0x134   :  { %v163_v15 = vadd.f32 1.0, %v1425_v14 }
 0x136   :  { %1426 = vrcp.f32 %v163_v15 }
 0x140   :  { %v1427_v16 = vpop.eup %1426 }
 0x141   :  { %v177_v27 = vsub.f32 1.0, %v1427_v16 }
 0x199   :  { %v168_v17 = vpop.permute.xlu0 %167 }
 0x19a   :  { %v170_v18 = vmul.f32 %v1427_v16, %v168_v17 }
 0x19c   :  { %172 = vrot.lane.b32.xlu0 %v170_v18, %s1618_s20 }
 0x20e   :  { %v173_v19 = vpop.permute.xlu0 %172 }
 0x20f   :  { %v175_v20 = vadd.f32 %v173_v19, %v159_v11  ;;  %v432_v11 = vld [vmem:[%s431_s27] sm:$0x1] }
 0x211   :  { %1428 = vtanh.f32 %v175_v20 }
 0x21b   :  { %v1429_v24 = vpop.eup %1428 }
 0x21c   :  { %179 = vrot.lane.b32.xlu1 %v1429_v24, %s1619_s21 }
 0x220   :  { %187 = vrot.lane.b32.xlu1 %v186_v25, %s1617_s19 }
 0x28e   :  { %v180_v26 = vpop.permute.xlu1 %179 }
 0x28f   :  { %v182_v29 = vmul.f32 %v180_v26, %v177_v27 }
 0x292   :  { %v188_v28 = vpop.permute.xlu1 %187 }
 0x293   :  { %v190_v30 = vmul.f32 %v1427_v16, %v188_v28 }
 0x295   :  { %v191_v31 = vadd.f32 %v190_v30, %v182_v29  ;;  %v546_v30 = vld [vmem:[%s545_s2] sm:$0x1] }
 0x297   :  { %193 = vrot.lane.b32.xlu0 %v191_v31, %s1619_s21 }
 0x309   :  { %v194_v32 = vpop.permute.xlu0 %193 }
 0x30a   :  { %197 = vst.msk [vmem:[#allocation2] sm:$0x1] %vm196_vm2, %v194_v32  ;;  %1277 = vmatmul.mubr.msk.f32.vlgmr.msra.gmra.mrb[0].mxu1 %vm72_vm0, %v194_v32 }
 0x30b   :  { %1376 = vmatpush3.bf16.msra.mxu1 %v1725_v5  ;;  %1298 = vmatprep.mubr.msk.f32.mxu1 %vm1615_vm1, %v1616_v1 }
 0x30c   :  { %1377 = vmatprep.subr.bf16.mxu1 %v1614_v0 }
 0x30f   :  { %1379 = vmatpush3.bf16.msra.mxu1 %v1728_v7 }
 0x310   :  { %1386 = vmatprep.subr.bf16.mxu1 %v1614_v0 }
 0x3dd   :  { %v277_v34 = vpop.f32.mrb[0].mxu1 }
 0x3de   :  { %v281_v35 = vadd.f32 %v277_v34, %v204_v33  ;;  %v1278_v36 = vpop.f32.mrb[1].mxu1 }
 0x3e0   :  { %289 = vrot.lane.b32.xlu1 %v281_v35, %s1617_s19  ;;  %v1145_v37 = vmul.f32 -1.442695, %v281_v35 }
 0x3e2   :  { %1430 = vpow2.f32 %v1145_v37 }
 0x3ec   :  { %v1431_v38 = vpop.eup %1430 }
 0x3ed   :  { %v285_v39 = vadd.f32 1.0, %v1431_v38 }
 0x3ef   :  { %1432 = vrcp.f32 %v285_v39 }
 0x3f9   :  { %v1433_v40 = vpop.eup %1432 }
 0x3fa   :  { %v299_v46 = vsub.f32 1.0, %v1433_v40  ;;  %v305_v48 = vmul.f32 %v1433_v40, %v191_v31 }
 0x452   :  { %v290_v41 = vpop.permute.xlu1 %289 }
 0x453   :  { %v292_v42 = vmul.f32 %v1433_v40, %v290_v41 }
 0x455   :  { %294 = vrot.lane.b32.xlu0 %v292_v42, %s1618_s20 }
 0x4c7   :  { %v295_v43 = vpop.permute.xlu0 %294 }
 0x4c8   :  { %v297_v44 = vadd.f32 %v295_v43, %v281_v35 }
 0x4ca   :  { %1434 = vtanh.f32 %v297_v44 }
 0x4d4   :  { %v1435_v45 = vpop.eup %1434 }
 0x4d5   :  { %301 = vrot.lane.b32.xlu1 %v1435_v45, %s1619_s21 }
 0x547   :  { %v302_v47 = vpop.permute.xlu1 %301 }
 0x548   :  { %v304_v49 = vmul.f32 %v302_v47, %v299_v46 }
 0x54a   :  { %v306_v50 = vadd.f32 %v305_v48, %v304_v49  ;;  %v660_v49 = vld [vmem:[%s659_s30] sm:$0x1] }
 0x54c   :  { %308 = vrot.lane.b32.xlu0 %v306_v50, %s1619_s21 }
 0x5be   :  { %v309_v51 = vpop.permute.xlu0 %308 }
 0x5bf   :  { %311 = vst.msk [vmem:[#allocation2 + $0x1] sm:$0x1] %vm196_vm2, %v309_v51  ;;  %1288 = vmatmul.mubr.msk.f32.vlgmr.msra.gmra.mrb[2].mxu0 %vm72_vm0, %v309_v51 }
 0x5c0   :  { %1382 = vmatpush3.bf16.msra.mxu0 %v1725_v5  ;;  %1309 = vmatprep.mubr.msk.f32.mxu0 %vm1615_vm1, %v1616_v1 }
 0x5c1   :  { %1383 = vmatprep.subr.bf16.mxu0 %v1614_v0 }
 0x5c4   :  { %1385 = vmatpush3.bf16.msra.mxu0 %v1728_v7 }
 0x5c5   :  { %1392 = vmatprep.subr.bf16.mxu0 %v1614_v0 }
 0x692   :  { %v391_v53 = vpop.f32.mrb[2].mxu0 }
 0x693   :  { %v395_v54 = vadd.f32 %v391_v53, %v318_v52  ;;  %v1289_v55 = vpop.f32.mrb[3].mxu0 }
 0x695   :  { %403 = vrot.lane.b32.xlu1 %v395_v54, %s1617_s19  ;;  %v1153_v56 = vmul.f32 -1.442695, %v395_v54 }
 0x697   :  { %1436 = vpow2.f32 %v1153_v56 }
 0x6a1   :  { %v1437_v57 = vpop.eup %1436 }
 0x6a2   :  { %v399_v58 = vadd.f32 1.0, %v1437_v57 }
 0x6a4   :  { %1438 = vrcp.f32 %v399_v58 }
 0x6ae   :  { %v1439_v59 = vpop.eup %1438 }
 0x6af   :  { %v413_v3 = vsub.f32 1.0, %v1439_v59  ;;  %v419_v6 = vmul.f32 %v1439_v59, %v306_v50 }
 0x707   :  { %v404_v60 = vpop.permute.xlu1 %403 }
 0x708   :  { %v406_v61 = vmul.f32 %v1439_v59, %v404_v60 }
 0x70a   :  { %408 = vrot.lane.b32.xlu0 %v406_v61, %s1618_s20 }
 0x77c   :  { %v409_v62 = vpop.permute.xlu0 %408 }
 0x77d   :  { %v411_v63 = vadd.f32 %v409_v62, %v395_v54 }
 0x77f   :  { %1440 = vtanh.f32 %v411_v63 }
 0x789   :  { %v1441_v2 = vpop.eup %1440 }
 0x78a   :  { %415 = vrot.lane.b32.xlu1 %v1441_v2, %s1619_s21 }
 0x7fc   :  { %v416_v4 = vpop.permute.xlu1 %415 }
 0x7fd   :  { %v418_v8 = vmul.f32 %v416_v4, %v413_v3  ;;  %v774_v4 = vld [vmem:[%s773_s9] sm:$0x1] }
 0x7ff   :  { %v420_v9 = vadd.f32 %v419_v6, %v418_v8 }
 0x801   :  { %422 = vrot.lane.b32.xlu0 %v420_v9, %s1619_s21 }
 0x873   :  { %v423_v10 = vpop.permute.xlu0 %422 }
 0x874   :  { %425 = vst.msk [vmem:[#allocation2 + $0x2] sm:$0x1] %vm196_vm2, %v423_v10  ;;  %1299 = vmatmul.mubr.msk.f32.vlgmr.msra.gmra.mrb[2].mxu1 %vm72_vm0, %v423_v10 }
 0x875   :  { %1388 = vmatpush3.bf16.msra.mxu1 %v1725_v5  ;;  %1320 = vmatprep.mubr.msk.f32.mxu1 %vm1615_vm1, %v1616_v1 }
 0x876   :  { %1389 = vmatprep.subr.bf16.mxu1 %v1614_v0 }
 0x879   :  { %1391 = vmatpush3.bf16.msra.mxu1 %v1728_v7 }
 0x87a   :  { %1398 = vmatprep.subr.bf16.mxu1 %v1614_v0 }
 0x947   :  { %v505_v12 = vpop.f32.mrb[2].mxu1 }
 0x948   :  { %v509_v13 = vadd.f32 %v505_v12, %v432_v11  ;;  %v1300_v14 = vpop.f32.mrb[3].mxu1 }
 0x94a   :  { %517 = vrot.lane.b32.xlu1 %v509_v13, %s1617_s19  ;;  %v1161_v15 = vmul.f32 -1.442695, %v509_v13 }
 0x94c   :  { %1442 = vpow2.f32 %v1161_v15 }
 0x956   :  { %v1443_v16 = vpop.eup %1442 }
 0x957   :  { %v513_v17 = vadd.f32 1.0, %v1443_v16 }
 0x959   :  { %1444 = vrcp.f32 %v513_v17 }
 0x963   :  { %v1445_v18 = vpop.eup %1444 }
 0x964   :  { %v527_v24 = vsub.f32 1.0, %v1445_v18  ;;  %v533_v26 = vmul.f32 %v1445_v18, %v420_v9 }
 0x9bc   :  { %v518_v19 = vpop.permute.xlu1 %517 }
 0x9bd   :  { %v520_v20 = vmul.f32 %v1445_v18, %v518_v19 }
 0x9bf   :  { %522 = vrot.lane.b32.xlu0 %v520_v20, %s1618_s20 }
 0xa31   :  { %v523_v21 = vpop.permute.xlu0 %522 }
 0xa32   :  { %v525_v22 = vadd.f32 %v523_v21, %v509_v13 }
 0xa34   :  { %1446 = vtanh.f32 %v525_v22 }
 0xa3e   :  { %v1447_v23 = vpop.eup %1446 }
 0xa3f   :  { %529 = vrot.lane.b32.xlu1 %v1447_v23, %s1619_s21 }
 0xab1   :  { %v530_v25 = vpop.permute.xlu1 %529 }
 0xab2   :  { %v532_v27 = vmul.f32 %v530_v25, %v527_v24  ;;  %v888_v24 = vld [vmem:[%s887_s11] sm:$0x1] }
 0xab4   :  { %v534_v28 = vadd.f32 %v533_v26, %v532_v27 }
 0xab6   :  { %536 = vrot.lane.b32.xlu0 %v534_v28, %s1619_s21 }
 0xb28   :  { %v537_v29 = vpop.permute.xlu0 %536 }
 0xb29   :  { %539 = vst.msk [vmem:[#allocation2 + $0x3] sm:$0x1] %vm196_vm2, %v537_v29  ;;  %1310 = vmatmul.mubr.msk.f32.vlgmr.msra.gmra.mrb[4].mxu0 %vm72_vm0, %v537_v29 }
 0xb2a   :  { %1394 = vmatpush3.bf16.msra.mxu0 %v1725_v5  ;;  %1331 = vmatprep.mubr.msk.f32.mxu0 %vm1615_vm1, %v1616_v1 }
 0xb2b   :  { %1395 = vmatprep.subr.bf16.mxu0 %v1614_v0 }
 0xb2e   :  { %1397 = vmatpush3.bf16.msra.mxu0 %v1728_v7 }
 0xb2f   :  { %1404 = vmatprep.subr.bf16.mxu0 %v1614_v0 }
 0xbfc   :  { %v619_v31 = vpop.f32.mrb[4].mxu0 }
 0xbfd   :  { %v623_v32 = vadd.f32 %v619_v31, %v546_v30  ;;  %v1311_v33 = vpop.f32.mrb[5].mxu0 }
 0xbff   :  { %631 = vrot.lane.b32.xlu1 %v623_v32, %s1617_s19  ;;  %v1169_v34 = vmul.f32 -1.442695, %v623_v32 }
 0xc01   :  { %1448 = vpow2.f32 %v1169_v34 }
 0xc0b   :  { %v1449_v35 = vpop.eup %1448 }
 0xc0c   :  { %v627_v36 = vadd.f32 1.0, %v1449_v35 }
 0xc0e   :  { %1450 = vrcp.f32 %v627_v36 }
 0xc18   :  { %v1451_v37 = vpop.eup %1450 }
 0xc19   :  { %v641_v43 = vsub.f32 1.0, %v1451_v37  ;;  %v647_v45 = vmul.f32 %v1451_v37, %v534_v28 }
 0xc71   :  { %v632_v38 = vpop.permute.xlu1 %631 }
 0xc72   :  { %v634_v39 = vmul.f32 %v1451_v37, %v632_v38  ;;  %v998_v37 = vld [vmem:[#allocation10] sm:$0xff]  ;;  %v999_v38 = vld [vmem:[#allocation10 + $0x8] sm:$0xff] }
 0xc74   :  { %636 = vrot.lane.b32.xlu0 %v634_v39, %s1618_s20  ;;  %v1405_v39 = vpack.c.bf16 %v999_v38, %v998_v37 }
 0xce6   :  { %v637_v40 = vpop.permute.xlu0 %636 }
 0xce7   :  { %v639_v41 = vadd.f32 %v637_v40, %v623_v32  ;;  %v1000_v40 = vld [vmem:[#allocation10 + $0x10] sm:$0xff] }
 0xce9   :  { %1452 = vtanh.f32 %v639_v41  ;;  %v1001_v41 = vld [vmem:[#allocation10 + $0x18] sm:$0xff] }
 0xcf3   :  { %v1453_v42 = vpop.eup %1452 }
 0xcf4   :  { %643 = vrot.lane.b32.xlu1 %v1453_v42, %s1619_s21  ;;  %v1408_v42 = vpack.c.bf16 %v1001_v41, %v1000_v40 }
 0xd66   :  { %v644_v44 = vpop.permute.xlu1 %643 }
 0xd67   :  { %v646_v46 = vmul.f32 %v644_v44, %v641_v43 }
 0xd69   :  { %v648_v47 = vadd.f32 %v647_v45, %v646_v46 }
 0xd6b   :  { %650 = vrot.lane.b32.xlu0 %v648_v47, %s1619_s21 }
 0xddd   :  { %v651_v48 = vpop.permute.xlu0 %650 }
 0xdde   :  { %653 = vst.msk [vmem:[#allocation2 + $0x4] sm:$0x1] %vm196_vm2, %v651_v48  ;;  %1321 = vmatmul.mubr.msk.f32.vlgmr.msra.gmra.mrb[4].mxu1 %vm72_vm0, %v651_v48 }
 0xddf   :  { %1400 = vmatpush3.bf16.msra.mxu1 %v1725_v5  ;;  %1342 = vmatprep.mubr.msk.f32.mxu1 %vm1615_vm1, %v1616_v1 }
 0xde0   :  { %1401 = vmatprep.subr.bf16.mxu1 %v1614_v0 }
 0xde3   :  { %1403 = vmatpush3.bf16.msra.mxu1 %v1728_v7 }
 0xeb1   :  { %v733_v50 = vpop.f32.mrb[4].mxu1 }
 0xeb2   :  { %v737_v51 = vadd.f32 %v733_v50, %v660_v49  ;;  %v1322_v52 = vpop.f32.mrb[5].mxu1 }
 0xeb4   :  { %745 = vrot.lane.b32.xlu1 %v737_v51, %s1617_s19  ;;  %v1177_v5 = vmul.f32 -1.442695, %v737_v51 }
 0xeb6   :  { %1454 = vpow2.f32 %v1177_v5 }
 0xec0   :  { %v1455_v53 = vpop.eup %1454 }
 0xec1   :  { %v741_v54 = vadd.f32 1.0, %v1455_v53 }
 0xec3   :  { %1456 = vrcp.f32 %v741_v54 }
 0xecd   :  { %v1457_v55 = vpop.eup %1456 }
 0xece   :  { %v755_v60 = vsub.f32 1.0, %v1457_v55  ;;  %v761_v62 = vmul.f32 %v1457_v55, %v648_v47 }
 0xf26   :  { %v746_v56 = vpop.permute.xlu1 %745 }
 0xf27   :  { %v748_v7 = vmul.f32 %v1457_v55, %v746_v56 }
 0xf29   :  { %750 = vrot.lane.b32.xlu0 %v748_v7, %s1618_s20 }
 0xf9b   :  { %v751_v57 = vpop.permute.xlu0 %750 }
 0xf9c   :  { %v753_v58 = vadd.f32 %v751_v57, %v737_v51 }
 0xf9e   :  { %1458 = vtanh.f32 %v753_v58 }
 0xfa8   :  { %v1459_v59 = vpop.eup %1458 }
 0xfa9   :  { %757 = vrot.lane.b32.xlu1 %v1459_v59, %s1619_s21 }
0x101b   :  { %v758_v61 = vpop.permute.xlu1 %757 }
0x101c   :  { %v760_v63 = vmul.f32 %v758_v61, %v755_v60 }
0x101e   :  { %v762_v2 = vadd.f32 %v761_v62, %v760_v63 }
0x1020   :  { %764 = vrot.lane.b32.xlu0 %v762_v2, %s1619_s21 }
0x1092   :  { %v765_v3 = vpop.permute.xlu0 %764 }
0x1093   :  { %767 = vst.msk [vmem:[#allocation2 + $0x5] sm:$0x1] %vm196_vm2, %v765_v3  ;;  %1332 = vmatmul.mubr.msk.f32.vlgmr.msra.gmra.mrb[6].mxu0 %vm72_vm0, %v765_v3 }
0x1094   :  { %1353 = vmatprep.mubr.msk.f32.mxu0 %vm1615_vm1, %v1616_v1  ;;  %1406 = vmatpush3.bf16.msra.mxu0 %v1405_v39 }
0x1095   :  { %1407 = vmatprep.subr.bf16.mxu0 %v1614_v0  ;;  %v1194_v0 = vld [vmem:[%s1860_s4] ss:$0 sm:$0xff] }
0x1098   :  { %1409 = vmatpush3.bf16.msra.mxu0 %v1408_v42 }
0x1166   :  { %v847_v6 = vpop.f32.mrb[6].mxu0 }
0x1167   :  { %v851_v8 = vadd.f32 %v847_v6, %v774_v4  ;;  %v1333_v9 = vpop.f32.mrb[7].mxu0 }
0x1169   :  { %859 = vrot.lane.b32.xlu1 %v851_v8, %s1617_s19  ;;  %v1185_v10 = vmul.f32 -1.442695, %v851_v8 }
0x116b   :  { %1460 = vpow2.f32 %v1185_v10 }
0x1175   :  { %v1461_v11 = vpop.eup %1460 }
0x1176   :  { %v855_v12 = vadd.f32 1.0, %v1461_v11 }
0x1178   :  { %1462 = vrcp.f32 %v855_v12 }
0x1182   :  { %v1463_v13 = vpop.eup %1462 }
0x1183   :  { %v869_v18 = vsub.f32 1.0, %v1463_v13  ;;  %v875_v20 = vmul.f32 %v1463_v13, %v762_v2 }
0x11db   :  { %v860_v14 = vpop.permute.xlu1 %859 }
0x11dc   :  { %v862_v1 = vmul.f32 %v1463_v13, %v860_v14 }
0x11de   :  { %864 = vrot.lane.b32.xlu0 %v862_v1, %s1618_s20 }
0x1250   :  { %v865_v15 = vpop.permute.xlu0 %864 }
0x1251   :  { %v867_v16 = vadd.f32 %v865_v15, %v851_v8 }
0x1253   :  { %1464 = vtanh.f32 %v867_v16 }
0x125d   :  { %v1465_v17 = vpop.eup %1464 }
0x125e   :  { %871 = vrot.lane.b32.xlu1 %v1465_v17, %s1619_s21 }
0x12d0   :  { %v872_v19 = vpop.permute.xlu1 %871 }
0x12d1   :  { %v874_v21 = vmul.f32 %v872_v19, %v869_v18 }
0x12d3   :  { %v876_v22 = vadd.f32 %v875_v20, %v874_v21 }
0x12d5   :  { %878 = vrot.lane.b32.xlu0 %v876_v22, %s1619_s21 }
0x1347   :  { %v879_v23 = vpop.permute.xlu0 %878 }
0x1348   :  { %881 = vst.msk [vmem:[#allocation2 + $0x6] sm:$0x1] %vm196_vm2, %v879_v23  ;;  %1343 = vmatmul.mubr.msk.f32.vlgmr.msra.gmra.mrb[6].mxu1 %vm72_vm0, %v879_v23 }
0x141b   :  { %v961_v25 = vpop.f32.mrb[6].mxu1 }
0x141c   :  { %v965_v26 = vadd.f32 %v961_v25, %v888_v24  ;;  %v1344_v27 = vpop.f32.mrb[7].mxu1 }
0x141e   :  { %973 = vrot.lane.b32.xlu1 %v965_v26, %s1617_s19  ;;  %v1193_v28 = vmul.f32 -1.442695, %v965_v26 }
0x1420   :  { %1466 = vpow2.f32 %v1193_v28 }
0x142a   :  { %v1467_v29 = vpop.eup %1466 }
0x142b   :  { %v969_v30 = vadd.f32 1.0, %v1467_v29 }
0x142d   :  { %1468 = vrcp.f32 %v969_v30 }
0x1437   :  { %v1469_v31 = vpop.eup %1468 }
0x1438   :  { %v983_v43 = vsub.f32 1.0, %v1469_v31  ;;  %v989_v45 = vmul.f32 %v1469_v31, %v876_v22 }
0x1490   :  { %v974_v32 = vpop.permute.xlu1 %973 }
0x1491   :  { %v976_v33 = vmul.f32 %v1469_v31, %v974_v32 }
0x1493   :  { %978 = vrot.lane.b32.xlu0 %v976_v33, %s1618_s20 }
0x1505   :  { %v979_v34 = vpop.permute.xlu0 %978 }
0x1506   :  { %v981_v35 = vadd.f32 %v979_v34, %v965_v26 }
0x1508   :  { %1470 = vtanh.f32 %v981_v35 }
0x1512   :  { %v1471_v36 = vpop.eup %1470 }
0x1513   :  { %985 = vrot.lane.b32.xlu1 %v1471_v36, %s1619_s21 }
0x1585   :  { %v986_v44 = vpop.permute.xlu1 %985 }
0x1586   :  { %v988_v46 = vmul.f32 %v986_v44, %v983_v43 }
0x1588   :  { %v990_v47 = vadd.f32 %v989_v45, %v988_v46 }
0x158a   :  { %992 = vrot.lane.b32.xlu0 %v990_v47, %s1619_s21 }
0x15fc   :  { %v993_v48 = vpop.permute.xlu0 %992 }
0x15fd   :  { %995 = vst.msk [vmem:[#allocation2 + $0x7] sm:$0x1] %vm196_vm2, %v993_v48  ;;  %996 = vst.msk [vmem:[#allocation12] sm:$0x1] %vm196_vm2, %v993_v48 }
0x1604   :  { %v997_v49 = vld [vmem:[#allocation2] sm:$0xff] }
0x1605   :  { %1354 = vmatmul.mubr.msk.f32.vlgmr.msra.gmra.mrb[8].mxu0 %vm72_vm0, %v997_v49 }
0x16d8   :  { %v1078_v50 = vpop.f32.mrb[8].mxu0 }
0x16d9   :  { %v1079_v51 = vadd.f32 %v1194_v0, %v1078_v50  ;;  %v1355_v52 = vpop.f32.mrb[9].mxu0 }
0x16db   :  { %1082 = vmax.xlane.f32.xlu1 %v1079_v51 }
0x1768   :  { %v1083_v5 = vpop.xlane.xlu1 %1082 }
0x1769   :  { %v1084_v53 = vsub.f32 %v1079_v51, %v1083_v5 }
0x176b   :  { %v1085_v54 = vmul.f32 1.442695, %v1084_v53 }
0x176d   :  { %1472 = vpow2.f32 %v1085_v54 }
0x1777   :  { %v1473_v55 = vpop.eup %1472 }
0x1778   :  { %1087 = vadd.xlane.f32.xlu0 %v1473_v55 }
0x1779   :  { %1565 = shalt.err (!%p1562_p7)
}
0x177a   :  { %s1566_s3 = scalar_lea.hbm %s1863_s7, 16 }
0x177b   :  { %p1567_p8 = scmp.ne.s32.totalorder %s1863_s7, %s1566_s3  ;;  %p1570_p9 = scmp.lt.u32.totalorder %s1566_s3, %s1863_s7 }
0x177d   :  { %p1572_p10 = pnand %p1570_p9, %p1567_p8 }
0x177f   :  { %1575 = shalt.err (!%p1572_p10)
}
0x1780   :  { %1112 = dma.vmem_to_hbm [thread:$0]  %s1110_s15, 16, %s1863_s7, [#allocation13]  }
0x1781   :  { %s1621_s22 = smov [#allocation11]  }
0x1782   :  { %s1099_s23 = sshll.u32 %s1621_s22, 4  ;;  %s1100_s23 = int_to_ptr.vmem [resolvable:$true] %s1099_s23 }
0x1783   :  { %s1576_s24 = scalar_lea.vmem %s1100_s23, 128  ;;  %p1581_p12 = scmp.lt.s32.totalorder %s1100_s23, %s1100_s23 }
0x1784   :  { %p1577_p11 = scmp.ne.s32.totalorder %s1100_s23, %s1576_s24  ;;  %p1582_p13 = scmp.lt.s32.totalorder %s1576_s24, %s1576_s24 }
0x1786   :  { %p1583_p0 = por %p1582_p13, %p1581_p12 }
0x1788   :  { %p1584_p1 = pnand %p1583_p0, %p1577_p11 }
0x1805   :  { %v1088_v56 = vpop.xlane.xlu0 %1087 }
0x1806   :  { %1474 = vlog2.f32 %v1088_v56 }
0x1810   :  { %v1475_v7 = vpop.eup %1474 }
0x1811   :  { %v1090_v57 = vmul.f32 0.6931472, %v1475_v7 }
0x1813   :  { %v1091_v58 = vsub.f32 %v1084_v53, %v1090_v57 }
0x1815   :  { %1092 = vst [vmem:[#allocation11] sm:$0xff] %v1091_v58 }
0x1816   :  { %1587 = shalt.err (!%p1584_p1)
}
0x1817   :  { %s1588_s7 = scalar_lea.hbm %s1862_s6, 128 }
0x1818   :  { %p1589_p2 = scmp.ne.s32.totalorder %s1862_s6, %s1588_s7  ;;  %p1592_p3 = scmp.lt.u32.totalorder %s1588_s7, %s1862_s6 }
0x181a   :  { %p1594_p4 = pnand %p1592_p3, %p1589_p2 }
0x181c   :  { %1597 = shalt.err (!%p1594_p4)
}
0x181d   :  { %1102 = dma.vmem_to_hbm [thread:$0]  %s1100_s23, 128, %s1862_s6, [#allocation7]  }
0x181e   :  { %1604 = dma.done.wait [#allocation7], 128  }
0x181f   :  { %1605 = vsyncadd [#allocation7], 4294967168 }
0x1820   :  { %1606 = dma.done.wait [#allocation13], 16  }
0x1821   :  { %1607 = vsyncadd [#allocation13], 4294967280 }
0x1822   :  { %1119 = vsyncpa [#allocation6], 1 }
0x1823   :  { %1120 = vsyncpa [#allocation9], 1 }
0x1824   :  { %1121 = vsyncpa [#allocation7], 1 }
0x1825   :  { %1122 = vsyncpa [#allocation13], 1 }

</bundles_post_ra>
